<compile_context>
chip_gen: v7x
topology: tpu7x:2x2x1
jax: 0.10.0
libtpu: 0.0.40
codegen_flags: <defaults>
</compile_context>

<pallas_src>
import jax
import jax.numpy as jnp
from jax.experimental import pallas as pl
from jax.experimental.pallas import tpu as pltpu


def _skipgram_kernel(emb_ref, w_ref, out_ref):
    # emb_ref: (B_pad, D)      bf16, resident across all grid steps (constant index map)
    # w_ref:   (D, TILE_V)     bf16, streamed lane-dense vocab tile of out_w.T
    # out_ref: (B_pad, TILE_V) f32 logits tile
    out_ref[...] = jax.lax.dot_general(
        emb_ref[...],
        w_ref[...],
        dimension_numbers=(((1,), (0,)), ((), ())),
        preferred_element_type=jnp.float32,
    )


def _pick_tile_v(v, d, b_pad, *, vmem_budget_bytes=28 * 1024 * 1024):
    """Largest lane-dense vocab tile that keeps double-buffered traffic in budget."""
    # Per vocab column: bf16 W (2*D bytes) + f32 out (4*B_pad bytes), double-buffered.
    bytes_per_col = 2 * (2 * d + 4 * b_pad)
    tile_v = max(128, (vmem_budget_bytes // bytes_per_col) // 128 * 128)
    # No point tiling beyond the (padded) vocab itself.
    v_rounded = ((v + 127) // 128) * 128
    return min(tile_v, v_rounded)


def skipgram_forward(x_ids, emb_w, out_w, *, compute_dtype=jnp.bfloat16):
    """x_ids: [B] int token ids; emb_w: [V, D]; out_w: [V, D] (PyTorch Linear [out, in]).

    Returns [B, V] float32 logits = emb_w[x_ids] @ out_w.T (bf16 operands, fp32 acc).
    """
    B = x_ids.shape[0]
    V, D = emb_w.shape
    assert out_w.shape == (V, D)

    # Pad batch to a sublane multiple so output stores are unmasked vst.
    B_pad = ((B + 7) // 8) * 8

    tile_v = _pick_tile_v(V, D, B_pad)
    num_tiles = pl.cdiv(V, tile_v)
    v_pad = num_tiles * tile_v

    # Gather the B embedding rows in the wrapper (tiny [B, D] read), cast once to bf16.
    ids = jnp.clip(x_ids.astype(jnp.int32), 0, V - 1)
    emb = jnp.take(emb_w, ids, axis=0).astype(compute_dtype)
    if B_pad != B:
        emb = jnp.pad(emb, ((0, B_pad - B), (0, 0)))

    # Pre-transposed, lane-dense projection weight: (D, V_pad) in bf16.
    w_t = out_w.T.astype(compute_dtype)
    if v_pad != V:
        w_t = jnp.pad(w_t, ((0, 0), (0, v_pad - V)))

    grid_spec = pltpu.PrefetchScalarGridSpec(
        num_scalar_prefetch=0,
        grid=(num_tiles,),
        in_specs=[
            pl.BlockSpec((B_pad, D), lambda j: (0, 0)),      # emb rows, VMEM-resident
            pl.BlockSpec((D, tile_v), lambda j: (0, j)),     # streamed W vocab tile
        ],
        out_specs=pl.BlockSpec((B_pad, tile_v), lambda j: (0, j)),
    )

    logits_pad = pl.pallas_call(
        _skipgram_kernel,
        out_shape=jax.ShapeDtypeStruct((B_pad, v_pad), jnp.float32),
        grid_spec=grid_spec,
        compiler_params=pltpu.CompilerParams(
            # No cross-step carry anymore -> vocab tiles are independent (megacore OK).
            dimension_semantics=("parallel",),
            vmem_limit_bytes=48 * 1024 * 1024,
        ),
        cost_estimate=pl.CostEstimate(
            flops=2 * B_pad * D * v_pad,
            transcendentals=0,
            bytes_accessed=(
                v_pad * D * jnp.dtype(compute_dtype).itemsize
                + B_pad * D * jnp.dtype(compute_dtype).itemsize
                + B_pad * v_pad * 4
            ),
        ),
    )(emb, w_t)

    return logits_pad[:B, :V]


if __name__ == "__main__":
    # Small config consistent with SkipGram(vocab_size, embedding_dim).
    vocab_size = 64
    embedding_dim = 32
    batch = 8

    key = jax.random.PRNGKey(0)
    k_emb, k_out, k_idx = jax.random.split(key, 3)

    emb_w = jax.random.normal(k_emb, (vocab_size, embedding_dim), dtype=jnp.float32)
    out_w = jax.random.normal(k_out, (vocab_size, embedding_dim), dtype=jnp.float32) * 0.1
    x_ids = jax.random.randint(k_idx, (batch,), 0, vocab_size, dtype=jnp.int32)

    logits = skipgram_forward(x_ids, emb_w, out_w)
    logits = jax.block_until_ready(logits)

    # Pure-JAX reference with the same bf16 rounding of operands (fp32 accumulation).
    emb_bf = emb_w[x_ids].astype(jnp.bfloat16).astype(jnp.float32)
    w_bf = out_w.astype(jnp.bfloat16).astype(jnp.float32)
    ref = emb_bf @ w_bf.T

    assert logits.shape == (batch, vocab_size)
    assert jnp.allclose(logits, ref, atol=1e-2, rtol=1e-2), float(
        jnp.max(jnp.abs(logits - ref))
    )

    print("KERNEL_OK")
</pallas_src>

<mosaic_0001>
module attributes {stable_mosaic.version = 11 : i64} {
  func.func @_skipgram_kernel(%arg0: i32, %arg1: memref<8x32xbf16, #tpu.memory_space<vmem>>, %arg2: memref<32x128xbf16, #tpu.memory_space<vmem>>, %arg3: memref<8x128xf32, #tpu.memory_space<vmem>>) attributes {dimension_semantics = [#tpu.dimension_semantics<parallel>], iteration_bounds = array<i64: 1>, scalar_prefetch = 0 : i64, scratch_operands = 0 : i64, tpu.core_type = #tpu.core_type<tc>, window_params = [{pipeline_mode = #tpu.pipeline_mode<synchronous>, transform_indices = @transform_0, window_bounds = array<i64: 8, 32>}, {transform_indices = @transform_1, window_bounds = array<i64: 32, 128>}, {transform_indices = @transform_2, window_bounds = array<i64: 8, 128>}]} {
    %c0 = arith.constant 0 : index
    %c0_0 = arith.constant 0 : index
    %0 = vector.load %arg1[%c0, %c0_0] : memref<8x32xbf16, #tpu.memory_space<vmem>>, vector<8x32xbf16>
    %c0_1 = arith.constant 0 : index
    %c0_2 = arith.constant 0 : index
    %1 = vector.load %arg2[%c0_1, %c0_2] : memref<32x128xbf16, #tpu.memory_space<vmem>>, vector<32x128xbf16>
    %cst = arith.constant dense<0.000000e+00> : vector<8x128xf32>
    %2 = tpu.matmul %0, %1, %cst {dimension_numbers = #tpu.dot_dimension_numbers<[1], [0], [0], [1], [0, 0, 1, 1], [], []>} : vector<8x32xbf16>, vector<32x128xbf16>, vector<8x128xf32> -> vector<8x128xf32>
    %c0_3 = arith.constant 0 : index
    %c0_4 = arith.constant 0 : index
    %3 = vector.load %arg3[%c0_3, %c0_4] : memref<8x128xf32, #tpu.memory_space<vmem>>, vector<8x128xf32>
    tpu.vector_store %arg3[%c0_3, %c0_4], %2 {strides = array<i32>} : memref<8x128xf32, #tpu.memory_space<vmem>>, vector<8x128xf32>,
    return
  }
  func.func @transform_0(%arg0: i32) -> (i32, i32) {
    %c0_i32 = arith.constant 0 : i32
    %c0_i32_0 = arith.constant 0 : i32
    %c0_i32_1 = arith.constant 0 : i32
    return %c0_i32, %c0_i32_0 : i32, i32
  }
  func.func @transform_1(%arg0: i32) -> (i32, i32) {
    %c0_i32 = arith.constant 0 : i32
    %c0_i32_0 = arith.constant 0 : i32
    return %c0_i32, %arg0 : i32, i32
  }
  func.func @transform_2(%arg0: i32) -> (i32, i32) {
    %c0_i32 = arith.constant 0 : i32
    %c0_i32_0 = arith.constant 0 : i32
    return %c0_i32, %arg0 : i32, i32
  }
}

</mosaic_0001>

<bundles_post_ra>
// kernel: tpu_custom_call.1
= control target key start
LH: loop header
LB: loop body
LE: loop exit
PB: predicated region body
PF: predicated region fallthrough
CT: control target
= control target key end

     0   :  { %7 = vsyncpa [#allocation3], 0  ;;  %s277_s0 = inlined_call_operand.hbm [shape: bf16[8,32], index: 0, kind: input, shape index: {}]   ;;  %s278_s1 = inlined_call_operand.hbm [shape: bf16[32,128], index: 1, kind: input, shape index: {}]   ;;  %s279_s2 = inlined_call_operand.hbm [shape: f32[8,128], index: 2, kind: output, shape index: {}]  }
   0x1   :  { %8 = vsyncpa [#allocation6], 0 }
   0x2   :  { %9 = vsyncpa [#allocation4], 0  ;;  %s212_s9 = smov [#allocation2]   ;;  %s213_s11 = smov [#allocation5]  }
   0x3   :  { %s16_s10 = sshll.u32 %s212_s9, 4  ;;  %s25_s12 = sshll.u32 %s213_s11, 4  ;;  %s17_s10 = int_to_ptr.vmem [resolvable:$true] %s16_s10  ;;  %s234_s12 = int_to_ptr.vmem [resolvable:$true] %s25_s12 }
   0x4   :  { %s140_s15 = scalar_lea.hbm %s277_s0, 64 }
   0x5   :  { %p141_p0 = scmp.ne.s32.totalorder %s277_s0, %s140_s15  ;;  %p144_p1 = scmp.lt.u32.totalorder %s140_s15, %s277_s0 }
   0x7   :  { %p146_p2 = pnand %p144_p1, %p141_p0 }
   0x9   :  { %149 = shalt.err (!%p146_p2)
}
   0xa   :  { %s150_s20 = scalar_lea.vmem %s17_s10, 64  ;;  %p155_p4 = scmp.lt.s32.totalorder %s17_s10, %s17_s10 }
   0xb   :  { %p151_p3 = scmp.ne.s32.totalorder %s17_s10, %s150_s20  ;;  %p156_p5 = scmp.lt.s32.totalorder %s150_s20, %s150_s20 }
   0xd   :  { %p157_p6 = por %p156_p5, %p155_p4 }
   0xf   :  { %p158_p7 = pnand %p157_p6, %p151_p3 }
  0x11   :  { %161 = shalt.err (!%p158_p7)
}
  0x12   :  { %19 = dma.hbm_to_vmem [thread:$0]  %s277_s0, 64, %s17_s10, [#allocation3]  }
  0x13   :  { %s162_s25 = scalar_lea.hbm %s278_s1, 256 }
  0x14   :  { %p163_p8 = scmp.ne.s32.totalorder %s278_s1, %s162_s25  ;;  %p166_p9 = scmp.lt.u32.totalorder %s162_s25, %s278_s1 }
  0x16   :  { %p168_p10 = pnand %p166_p9, %p163_p8 }
  0x18   :  { %171 = shalt.err (!%p168_p10)
}
  0x19   :  { %s172_s30 = scalar_lea.vmem %s234_s12, 256  ;;  %p177_p12 = scmp.lt.s32.totalorder %s234_s12, %s234_s12 }
  0x1a   :  { %p173_p11 = scmp.ne.s32.totalorder %s234_s12, %s172_s30  ;;  %p178_p13 = scmp.lt.s32.totalorder %s172_s30, %s172_s30 }
  0x1c   :  { %p179_p0 = por %p178_p13, %p177_p12 }
  0x1e   :  { %p180_p1 = pnand %p179_p0, %p173_p11 }
  0x20   :  { %183 = shalt.err (!%p180_p1)
}
  0x21   :  { %s214_s0 = smov 64   ;;  %s215_s3 = smov 4  }
  0x22   :  { %31 = dma.hbm_to_vmem [thread:$0]  %s278_s1, 256, %s234_s12, [#allocation6], %s214_s0, %s214_s0, %s215_s3  }
  0x23   :  { %206 = dma.done.wait [#allocation3], 64  }
  0x24   :  { %207 = vsyncadd [#allocation3], 4294967232 }
  0x25   :  { %208 = dma.done.wait [#allocation6], 256  }
  0x26   :  { %209 = vsyncadd [#allocation6], 4294967040  ;;  %v216_v0 = vmov 0.0   ;;  %vm217_vm0 = vmmov 0   ;;  %v138_v1 = vld [vmem:[#allocation5] sm:$0xff]   ;;  %v139_v2 = vld [vmem:[#allocation5 + $0x8] sm:$0xff]  }
  0x27   :  { %123 = vmatprep.subr.bf16.mxu0 %v216_v0  ;;  %127 = vmatprep.mubr.msk.bf16.mxu0 %vm217_vm0, %v216_v0  ;;  %v39_v3 = vld [vmem:[#allocation2] sm:$0xf]  ;;  %vm56_vm1 = vcmask 261120   ;;  %s218_s6 = smov [#allocation7]  }
  0x28   :  { %124 = vmatpush3.bf16.msra.mxu0 %v138_v1  ;;  %s107_s7 = sshll.u32 %s218_s6, 4  ;;  %s108_s7 = int_to_ptr.vmem [resolvable:$true] %s107_s7 }
  0x29   :  { %125 = vmatprep.subr.bf16.mxu0 %v216_v0  ;;  %s184_s1 = scalar_lea.vmem %s108_s7, 128  ;;  %p189_p3 = scmp.lt.s32.totalorder %s108_s7, %s108_s7 }
  0x2a   :  { %p185_p2 = scmp.ne.s32.totalorder %s108_s7, %s184_s1  ;;  %p190_p4 = scmp.lt.s32.totalorder %s184_s1, %s184_s1 }
  0x2c   :  { %126 = vmatpush3.bf16.msra.mxu0 %v139_v2  ;;  %p191_p5 = por %p190_p4, %p189_p3 }
  0x2e   :  { %p192_p6 = pnand %p191_p5, %p185_p2 }
  0x2f   :  { %128 = vmatmul.mubr.msk.bf16.vlgmr.msra.gmra.mrb[0].mxu0 %vm56_vm1, %v39_v3 }
 0x102   :  { %v94_v4 = vpop.f32.mrb[0].mxu0 }
 0x103   :  { %100 = vst [vmem:[#allocation7] sm:$0xff] %v94_v4  ;;  %v129_v5 = vpop.f32.mrb[1].mxu0 }
 0x104   :  { %v97_v6 = vpop.f32.mrb[2].mxu0 }
 0x105   :  { %195 = shalt.err (!%p192_p6)
}
 0x106   :  { %s196_s10 = scalar_lea.hbm %s279_s2, 128 }
 0x107   :  { %p197_p7 = scmp.ne.s32.totalorder %s279_s2, %s196_s10  ;;  %p200_p8 = scmp.lt.u32.totalorder %s196_s10, %s279_s2 }
 0x109   :  { %p202_p9 = pnand %p200_p8, %p197_p7 }
 0x10b   :  { %205 = shalt.err (!%p202_p9)
}
 0x10c   :  { %110 = dma.vmem_to_hbm [thread:$0]  %s108_s7, 128, %s279_s2, [#allocation4]   ;;  %v130_v7 = vpop.f32.mrb[3].mxu0 }
 0x10d   :  { %210 = dma.done.wait [#allocation4], 128  }
 0x10e   :  { %211 = vsyncadd [#allocation4], 4294967168 }
 0x10f   :  { %114 = vsyncpa [#allocation3], 1 }
 0x110   :  { %115 = vsyncpa [#allocation6], 1 }
 0x111   :  { %116 = vsyncpa [#allocation4], 1 }

</bundles_post_ra>
